<compile_context>
chip_gen: v6e
topology: v6e:2x2x1
jax: 0.10.0
libtpu: 0.0.40
codegen_flags: <defaults>
</compile_context>

<pallas_src>
import functools

import jax
import jax.numpy as jnp
from jax import lax
from jax.experimental import pallas as pl
from jax.experimental.pallas import tpu as pltpu

LANE = 128
SUBLANE = 8


def _round_up(n, m):
    return ((n + m - 1) // m) * m


def _vmem_capacity_bytes():
    try:
        return int(pltpu.get_tpu_info().vmem_capacity_bytes)
    except Exception:
        # Conservative fallback (v7x per-TC) so we never over-promise VMEM.
        return 64 * 1024 * 1024


# --------------------------------------------------------------------------
# Kernels
# --------------------------------------------------------------------------
def _mlp_kernel_resident(x_ref, w1_ref, b1_ref, wh_ref, bh_ref, we_ref, be_ref,
                         o_ref, *, num_hidden, compute_dtype):
    """Whole weight stack VMEM-resident; one batch tile per grid step."""
    x = x_ref[...].astype(compute_dtype)
    h = jnp.dot(x, w1_ref[...], preferred_element_type=jnp.float32)
    h = jnp.maximum(h + b1_ref[...], 0.0).astype(compute_dtype)

    if num_hidden > 0:
        if num_hidden <= 8:
            # Full static unroll: gives the LLO scheduler visibility to overlap
            # MXU pops with the next layer's pushes and the VPU epilogue.
            for i in range(num_hidden):
                a = jnp.dot(h, wh_ref[i], preferred_element_type=jnp.float32)
                h = jnp.maximum(a + bh_ref[i], 0.0).astype(compute_dtype)
        else:
            def body(i, h):
                a = jnp.dot(h, wh_ref[i], preferred_element_type=jnp.float32)
                return jnp.maximum(a + bh_ref[i], 0.0).astype(compute_dtype)
            h = lax.fori_loop(0, num_hidden, body, h, unroll=4)

    a = jnp.dot(h, we_ref[...], preferred_element_type=jnp.float32)
    o_ref[...] = jnp.maximum(a + be_ref[...], 0.0).astype(o_ref.dtype)


def _mlp_kernel_streamed(x_ref, w1_ref, b1_ref, wh_ref, bh_ref, we_ref, be_ref,
                         o_ref, h_ref, *, compute_dtype):
    """Hidden-layer weights streamed over grid axis 1 (one layer live at a
    time, auto double-buffered); activation kept in VMEM scratch."""
    l = pl.program_id(1)

    @pl.when(l == 0)
    def _():
        x = x_ref[...].astype(compute_dtype)
        a = jnp.dot(x, w1_ref[...], preferred_element_type=jnp.float32)
        h_ref[...] = jnp.maximum(a + b1_ref[...], 0.0).astype(compute_dtype)

    a = jnp.dot(h_ref[...], wh_ref[0], preferred_element_type=jnp.float32)
    h_ref[...] = jnp.maximum(a + bh_ref[0], 0.0).astype(compute_dtype)

    @pl.when(l == pl.num_programs(1) - 1)
    def _():
        a = jnp.dot(h_ref[...], we_ref[...], preferred_element_type=jnp.float32)
        o_ref[...] = jnp.maximum(a + be_ref[...], 0.0).astype(o_ref.dtype)


# --------------------------------------------------------------------------
# Wrapper
# --------------------------------------------------------------------------
def mlp_forward(x, w1, b1, wh, bh, we, be, *, block_b=None,
                compute_dtype=jnp.bfloat16, out_dtype=None,
                weight_streaming=None):
    """out_dtype=jnp.bfloat16 halves output HBM traffic when the consumer
    tolerates it (biggest relative win on v5e).  Defaults to x.dtype."""
    B, Din = x.shape
    H = int(wh.shape[0])
    Dout = we.shape[1]
    out_dtype = x.dtype if out_dtype is None else out_dtype

    Din_p = _round_up(Din, LANE)
    Dout_p = _round_up(Dout, LANE)

    # Zero-pad feature dims once; zeros survive every Linear+ReLU exactly.
    def pad2(a, r, c):
        return jnp.pad(a, ((0, r - a.shape[0]), (0, c - a.shape[1])))

    # TODO(synk): on v7x, optionally cast wh_p/we_p to fp8 (f32 accumulate) for
    # 2x MXU rate and half the weight footprint once numerics are validated.
    w1_p = pad2(w1, Din_p, Dout_p).astype(compute_dtype)
    we_p = pad2(we, Dout_p, Dout_p).astype(compute_dtype)
    b1_p = pad2(b1, 1, Dout_p).astype(jnp.float32)
    be_p = pad2(be, 1, Dout_p).astype(jnp.float32)
    if H > 0:
        wh_p = jnp.pad(wh, ((0, 0), (0, Dout_p - Dout),
                            (0, Dout_p - Dout))).astype(compute_dtype)
        bh_p = jnp.pad(bh, ((0, 0), (0, 0),
                            (0, Dout_p - Dout))).astype(jnp.float32)
    else:  # dummy, skipped statically inside the kernel
        wh_p = jnp.zeros((1, Dout_p, Dout_p), compute_dtype)
        bh_p = jnp.zeros((1, 1, Dout_p), jnp.float32)

    # ---- batch tiling: large tiles to amortize per-step overhead, but at
    # least 2 grid steps whenever B allows so v7x's two TCs both get a share
    # of the 'parallel' axis (zero cost on single-TC v5e/v6e).
    if block_b is None:
        block_b = 1024 if max(Din_p, Dout_p) <= 512 else 512
    block_b = _round_up(block_b, SUBLANE)
    TB = min(block_b, max(SUBLANE, _round_up(pl.cdiv(B, 2), SUBLANE)))
    Bp = _round_up(B, TB)
    grid_b = Bp // TB

    # ---- skip the extra host-side pad/cast HBM pass when already aligned;
    # the bf16 cast then happens inside the kernel.
    if Bp == B and Din_p == Din:
        x_in = x
    else:
        x_in = jnp.pad(x, ((0, Bp - B), (0, Din_p - Din))).astype(compute_dtype)

    # ---- VMEM budget / path selection ------------------------------------
    cdt_bytes = jnp.dtype(compute_dtype).itemsize
    vmem_cap = _vmem_capacity_bytes()

    hidden_w_bytes = max(H, 1) * Dout_p * Dout_p * cdt_bytes
    fixed_w_bytes = ((w1_p.size + we_p.size) * cdt_bytes
                     + (b1_p.size + bh_p.size + be_p.size) * 4)
    resident_w_bytes = fixed_w_bytes + hidden_w_bytes

    # Single-buffer the resident weights only when the stack is big enough for
    # the saving to matter (default double-buffering of a few KiB is free).
    single_buffer_weights = resident_w_bytes > (4 << 20)
    w_buf = 1 if single_buffer_weights else 2

    act_bytes = (2 * TB * Din_p * jnp.dtype(x_in.dtype).itemsize      # x (dbl buf)
                 + 2 * TB * Dout_p * jnp.dtype(out_dtype).itemsize    # o (dbl buf)
                 + 6 * TB * Dout_p * 4)                               # f32 working set

    if weight_streaming is None:
        weight_streaming = (H >= 1 and
                            w_buf * resident_w_bytes + act_bytes
                            > int(0.6 * vmem_cap))
    weight_streaming = bool(weight_streaming) and H >= 1

    if weight_streaming:
        w_vmem = (w_buf * fixed_w_bytes
                  + 2 * Dout_p * Dout_p * cdt_bytes     # one hidden layer, dbl buf
                  + 2 * Dout_p * 4)
        scratch_bytes = TB * Dout_p * cdt_bytes
    else:
        w_vmem = w_buf * resident_w_bytes
        scratch_bytes = 0

    vmem_need = w_vmem + act_bytes + scratch_bytes
    vmem_limit = int(min(max(2 * vmem_need, 32 << 20), int(0.85 * vmem_cap)))

    def _resident(shape):
        idx = lambda *_: (0,) * len(shape)
        if single_buffer_weights:
            return pl.BlockSpec(shape, idx, pipeline_mode=pl.Buffered(1))
        return pl.BlockSpec(shape, idx)

    if not weight_streaming:
        kernel = functools.partial(_mlp_kernel_resident, num_hidden=H,
                                   compute_dtype=compute_dtype)
        out_p = pl.pallas_call(
            kernel,
            out_shape=jax.ShapeDtypeStruct((Bp, Dout_p), out_dtype),
            grid=(grid_b,),
            in_specs=[
                pl.BlockSpec((TB, Din_p), lambda i: (i, 0)),
                _resident(w1_p.shape),
                _resident(b1_p.shape),
                _resident(wh_p.shape),
                _resident(bh_p.shape),
                _resident(we_p.shape),
                _resident(be_p.shape),
            ],
            out_specs=pl.BlockSpec((TB, Dout_p), lambda i: (i, 0)),
            compiler_params=pltpu.CompilerParams(
                dimension_semantics=("parallel",),
                vmem_limit_bytes=vmem_limit,
            ),
        )(x_in, w1_p, b1_p, wh_p, bh_p, we_p, be_p)
    else:
        kernel = functools.partial(_mlp_kernel_streamed,
                                   compute_dtype=compute_dtype)
        out_p = pl.pallas_call(
            kernel,
            out_shape=jax.ShapeDtypeStruct((Bp, Dout_p), out_dtype),
            grid=(grid_b, H),
            in_specs=[
                pl.BlockSpec((TB, Din_p), lambda b, l: (b, 0)),
                _resident(w1_p.shape),
                _resident(b1_p.shape),
                pl.BlockSpec((1, Dout_p, Dout_p), lambda b, l: (l, 0, 0)),
                pl.BlockSpec((1, 1, Dout_p), lambda b, l: (l, 0, 0)),
                _resident(we_p.shape),
                _resident(be_p.shape),
            ],
            out_specs=pl.BlockSpec((TB, Dout_p), lambda b, l: (b, 0)),
            scratch_shapes=[pltpu.VMEM((TB, Dout_p), compute_dtype)],
            compiler_params=pltpu.CompilerParams(
                dimension_semantics=("parallel", "arbitrary"),
                vmem_limit_bytes=vmem_limit,
            ),
        )(x_in, w1_p, b1_p, wh_p, bh_p, we_p, be_p)

    # Skip the output-slice HBM pass when nothing was padded.
    if Bp == B and Dout_p == Dout:
        return out_p
    return out_p[:B, :Dout]


# --------------------------------------------------------------------------
# Parameters / reference
# --------------------------------------------------------------------------
def init_params(key, input_size, output_size, hidden_size):
    """Weights pre-transposed to (in, out) so the kernel computes x @ W + b
    (== PyTorch x @ W.T + b)."""
    ks = jax.random.split(key, 2 * (hidden_size + 2))
    ki = iter(ks)

    def lin(kw, kb, fan_in, fan_out):
        bound = 1.0 / jnp.sqrt(jnp.float32(fan_in))
        w = jax.random.uniform(kw, (fan_in, fan_out), jnp.float32, -bound, bound)
        b = jax.random.uniform(kb, (1, fan_out), jnp.float32, -bound, bound)
        return w, b

    w1, b1 = lin(next(ki), next(ki), input_size, output_size)

    wh_list, bh_list = [], []
    for _ in range(hidden_size):
        w, b = lin(next(ki), next(ki), output_size, output_size)
        wh_list.append(w)
        bh_list.append(b)
    if hidden_size > 0:
        wh = jnp.stack(wh_list, axis=0)
        bh = jnp.stack(bh_list, axis=0)
    else:
        wh = jnp.zeros((0, output_size, output_size), jnp.float32)
        bh = jnp.zeros((0, 1, output_size), jnp.float32)

    we, be = lin(next(ki), next(ki), output_size, output_size)
    return w1, b1, wh, bh, we, be


def reference_forward(x, w1, b1, wh, bh, we, be, compute_dtype=None):
    """Pure-JAX reference.  If compute_dtype is given, mimic the kernel's
    bf16-operand / f32-accumulate path for a tight comparison."""
    if compute_dtype is None:
        h = jnp.maximum(x @ w1 + b1, 0.0)
        for i in range(wh.shape[0]):
            h = jnp.maximum(h @ wh[i] + bh[i], 0.0)
        return jnp.maximum(h @ we + be, 0.0)
    cd = compute_dtype
    h = jnp.dot(x.astype(cd), w1.astype(cd), preferred_element_type=jnp.float32)
    h = jnp.maximum(h + b1, 0.0).astype(cd)
    for i in range(wh.shape[0]):
        a = jnp.dot(h, wh[i].astype(cd), preferred_element_type=jnp.float32)
        h = jnp.maximum(a + bh[i], 0.0).astype(cd)
    a = jnp.dot(h, we.astype(cd), preferred_element_type=jnp.float32)
    return jnp.maximum(a + be, 0.0).astype(x.dtype)


if __name__ == "__main__":
    key = jax.random.PRNGKey(0)

    # ---- Test 1: Model(input_size=16, output_size=32, hidden_size=2),
    #      resident-weight path (auto), padded features.
    k_params, k_x = jax.random.split(key)
    params = init_params(k_params, 16, 32, 2)
    x = jax.random.normal(k_x, (8, 16), jnp.float32)

    out = jax.block_until_ready(mlp_forward(x, *params))
    assert out.shape == (8, 32)
    ref_bf16 = reference_forward(x, *params, compute_dtype=jnp.bfloat16)
    assert jnp.allclose(out, ref_bf16, atol=5e-3, rtol=5e-3), \
        "test1: mismatch vs bf16-path reference"
    ref_f32 = reference_forward(x, *params)
    assert jnp.allclose(out, ref_f32, atol=5e-2, rtol=5e-2), \
        "test1: mismatch vs f32 reference"

    # ---- Test 2: same shapes, force the layer-streaming path
    #      (grid = (batch, layer), activation in VMEM scratch).
    out_s = jax.block_until_ready(mlp_forward(x, *params, weight_streaming=True))
    assert out_s.shape == (8, 32)
    assert jnp.allclose(out_s, ref_bf16, atol=5e-3, rtol=5e-3), \
        "test2: streamed path mismatch vs bf16-path reference"

    # ---- Test 3: already 128-aligned features, B=16 -> >=2 'parallel' grid
    #      steps, no host pad/cast and no output slice.
    k_params3, k_x3 = jax.random.split(jax.random.PRNGKey(1))
    params3 = init_params(k_params3, 128, 128, 3)
    x3 = jax.random.normal(k_x3, (16, 128), jnp.float32)
    out3 = jax.block_until_ready(mlp_forward(x3, *params3))
    assert out3.shape == (16, 128)
    ref3 = reference_forward(x3, *params3, compute_dtype=jnp.bfloat16)
    assert jnp.allclose(out3, ref3, atol=5e-3, rtol=5e-3), \
        "test3: aligned/no-pad path mismatch vs bf16-path reference"

    print("KERNEL_OK")
</pallas_src>

<mosaic_0001>
module attributes {stable_mosaic.version = 11 : i64} {
  func.func @_mlp_kernel_resident(%arg0: i32, %arg1: memref<8x128xbf16, #tpu.memory_space<vmem>>, %arg2: memref<128x128xbf16, #tpu.memory_space<vmem>>, %arg3: memref<1x128xf32, #tpu.memory_space<vmem>>, %arg4: memref<2x128x128xbf16, #tpu.memory_space<vmem>>, %arg5: memref<2x1x128xf32, #tpu.memory_space<vmem>>, %arg6: memref<128x128xbf16, #tpu.memory_space<vmem>>, %arg7: memref<1x128xf32, #tpu.memory_space<vmem>>, %arg8: memref<8x128xf32, #tpu.memory_space<vmem>>) attributes {dimension_semantics = [#tpu.dimension_semantics<parallel>], iteration_bounds = array<i64: 1>, scalar_prefetch = 0 : i64, scratch_operands = 0 : i64, tpu.core_type = #tpu.core_type<tc>, window_params = [{transform_indices = @transform_0, window_bounds = array<i64: 8, 128>}, {pipeline_mode = #tpu.pipeline_mode<synchronous>, transform_indices = @transform_1, window_bounds = array<i64: 128, 128>}, {pipeline_mode = #tpu.pipeline_mode<synchronous>, transform_indices = @transform_2, window_bounds = array<i64: 1, 128>}, {pipeline_mode = #tpu.pipeline_mode<synchronous>, transform_indices = @transform_3, window_bounds = array<i64: 2, 128, 128>}, {pipeline_mode = #tpu.pipeline_mode<synchronous>, transform_indices = @transform_4, window_bounds = array<i64: 2, 1, 128>}, {pipeline_mode = #tpu.pipeline_mode<synchronous>, transform_indices = @transform_5, window_bounds = array<i64: 128, 128>}, {pipeline_mode = #tpu.pipeline_mode<synchronous>, transform_indices = @transform_6, window_bounds = array<i64: 1, 128>}, {transform_indices = @transform_7, window_bounds = array<i64: 8, 128>}]} {
    %c0 = arith.constant 0 : index
    %c0_0 = arith.constant 0 : index
    %0 = vector.load %arg1[%c0, %c0_0] : memref<8x128xbf16, #tpu.memory_space<vmem>>, vector<8x128xbf16>
    %c0_1 = arith.constant 0 : index
    %c0_2 = arith.constant 0 : index
    %1 = vector.load %arg2[%c0_1, %c0_2] : memref<128x128xbf16, #tpu.memory_space<vmem>>, vector<128x128xbf16>
    %cst = arith.constant dense<0.000000e+00> : vector<8x128xf32>
    %2 = tpu.matmul %0, %1, %cst {dimension_numbers = #tpu.dot_dimension_numbers<[1], [0], [0], [1], [0, 0, 1, 1], [], []>} : vector<8x128xbf16>, vector<128x128xbf16>, vector<8x128xf32> -> vector<8x128xf32>
    %c0_3 = arith.constant 0 : index
    %c0_4 = arith.constant 0 : index
    %3 = vector.load %arg3[%c0_3, %c0_4] : memref<1x128xf32, #tpu.memory_space<vmem>>, vector<1x128xf32>
    %4 = vector.broadcast %3 : vector<1x128xf32> to vector<8x128xf32>
    %5 = arith.addf %2, %4 : vector<8x128xf32>
    %cst_5 = arith.constant 0.000000e+00 : f32
    %6 = vector.broadcast %cst_5 : f32 to vector<8x128xf32>
    %7 = arith.maximumf %5, %6 : vector<8x128xf32>
    %8 = arith.truncf %7 : vector<8x128xf32> to vector<8x128xbf16>
    %c0_6 = arith.constant 0 : index
    %c0_7 = arith.constant 0 : index
    %c0_8 = arith.constant 0 : index
    %9 = vector.load %arg4[%c0_6, %c0_7, %c0_8] : memref<2x128x128xbf16, #tpu.memory_space<vmem>>, vector<1x128x128xbf16>
    %10 = vector.shape_cast %9 : vector<1x128x128xbf16> to vector<128x128xbf16>
    %cst_9 = arith.constant dense<0.000000e+00> : vector<8x128xf32>
    %11 = tpu.matmul %8, %10, %cst_9 {dimension_numbers = #tpu.dot_dimension_numbers<[1], [0], [0], [1], [0, 0, 1, 1], [], []>} : vector<8x128xbf16>, vector<128x128xbf16>, vector<8x128xf32> -> vector<8x128xf32>
    %c0_10 = arith.constant 0 : index
    %c0_11 = arith.constant 0 : index
    %c0_12 = arith.constant 0 : index
    %12 = vector.load %arg5[%c0_10, %c0_11, %c0_12] : memref<2x1x128xf32, #tpu.memory_space<vmem>>, vector<1x1x128xf32>
    %13 = vector.shape_cast %12 : vector<1x1x128xf32> to vector<1x128xf32>
    %14 = vector.broadcast %13 : vector<1x128xf32> to vector<8x128xf32>
    %15 = arith.addf %11, %14 : vector<8x128xf32>
    %cst_13 = arith.constant 0.000000e+00 : f32
    %16 = vector.broadcast %cst_13 : f32 to vector<8x128xf32>
    %17 = arith.maximumf %15, %16 : vector<8x128xf32>
    %18 = arith.truncf %17 : vector<8x128xf32> to vector<8x128xbf16>
    %c1 = arith.constant 1 : index
    %c0_14 = arith.constant 0 : index
    %c0_15 = arith.constant 0 : index
    %19 = vector.load %arg4[%c1, %c0_14, %c0_15] : memref<2x128x128xbf16, #tpu.memory_space<vmem>>, vector<1x128x128xbf16>
    %20 = vector.shape_cast %19 : vector<1x128x128xbf16> to vector<128x128xbf16>
    %cst_16 = arith.constant dense<0.000000e+00> : vector<8x128xf32>
    %21 = tpu.matmul %18, %20, %cst_16 {dimension_numbers = #tpu.dot_dimension_numbers<[1], [0], [0], [1], [0, 0, 1, 1], [], []>} : vector<8x128xbf16>, vector<128x128xbf16>, vector<8x128xf32> -> vector<8x128xf32>
    %c1_17 = arith.constant 1 : index
    %c0_18 = arith.constant 0 : index
    %c0_19 = arith.constant 0 : index
    %22 = vector.load %arg5[%c1_17, %c0_18, %c0_19] : memref<2x1x128xf32, #tpu.memory_space<vmem>>, vector<1x1x128xf32>
    %23 = vector.shape_cast %22 : vector<1x1x128xf32> to vector<1x128xf32>
    %24 = vector.broadcast %23 : vector<1x128xf32> to vector<8x128xf32>
    %25 = arith.addf %21, %24 : vector<8x128xf32>
    %cst_20 = arith.constant 0.000000e+00 : f32
    %26 = vector.broadcast %cst_20 : f32 to vector<8x128xf32>
    %27 = arith.maximumf %25, %26 : vector<8x128xf32>
    %28 = arith.truncf %27 : vector<8x128xf32> to vector<8x128xbf16>
    %c0_21 = arith.constant 0 : index
    %c0_22 = arith.constant 0 : index
    %29 = vector.load %arg6[%c0_21, %c0_22] : memref<128x128xbf16, #tpu.memory_space<vmem>>, vector<128x128xbf16>
    %cst_23 = arith.constant dense<0.000000e+00> : vector<8x128xf32>
    %30 = tpu.matmul %28, %29, %cst_23 {dimension_numbers = #tpu.dot_dimension_numbers<[1], [0], [0], [1], [0, 0, 1, 1], [], []>} : vector<8x128xbf16>, vector<128x128xbf16>, vector<8x128xf32> -> vector<8x128xf32>
    %c0_24 = arith.constant 0 : index
    %c0_25 = arith.constant 0 : index
    %31 = vector.load %arg7[%c0_24, %c0_25] : memref<1x128xf32, #tpu.memory_space<vmem>>, vector<1x128xf32>
    %32 = vector.broadcast %31 : vector<1x128xf32> to vector<8x128xf32>
    %33 = arith.addf %30, %32 : vector<8x128xf32>
    %cst_26 = arith.constant 0.000000e+00 : f32
    %34 = vector.broadcast %cst_26 : f32 to vector<8x128xf32>
    %35 = arith.maximumf %33, %34 : vector<8x128xf32>
    %c0_27 = arith.constant 0 : index
    %c0_28 = arith.constant 0 : index
    %36 = vector.load %arg8[%c0_27, %c0_28] : memref<8x128xf32, #tpu.memory_space<vmem>>, vector<8x128xf32>
    tpu.vector_store %arg8[%c0_27, %c0_28], %35 {strides = array<i32>} : memref<8x128xf32, #tpu.memory_space<vmem>>, vector<8x128xf32>,
    return
  }
  func.func @transform_0(%arg0: i32) -> (i32, i32) {
    %c0_i32 = arith.constant 0 : i32
    %c0_i32_0 = arith.constant 0 : i32
    return %arg0, %c0_i32 : i32, i32
  }
  func.func @transform_1(%arg0: i32) -> (i32, i32) {
    %c0_i32 = arith.constant 0 : i32
    %c0_i32_0 = arith.constant 0 : i32
    %c0_i32_1 = arith.constant 0 : i32
    return %c0_i32, %c0_i32_0 : i32, i32
  }
  func.func @transform_2(%arg0: i32) -> (i32, i32) {
    %c0_i32 = arith.constant 0 : i32
    %c0_i32_0 = arith.constant 0 : i32
    %c0_i32_1 = arith.constant 0 : i32
    return %c0_i32, %c0_i32_0 : i32, i32
  }
  func.func @transform_3(%arg0: i32) -> (i32, i32, i32) {
    %c0_i32 = arith.constant 0 : i32
    %c0_i32_0 = arith.constant 0 : i32
    %c0_i32_1 = arith.constant 0 : i32
    %c0_i32_2 = arith.constant 0 : i32
    return %c0_i32, %c0_i32_0, %c0_i32_1 : i32, i32, i32
  }
  func.func @transform_4(%arg0: i32) -> (i32, i32, i32) {
    %c0_i32 = arith.constant 0 : i32
    %c0_i32_0 = arith.constant 0 : i32
    %c0_i32_1 = arith.constant 0 : i32
    %c0_i32_2 = arith.constant 0 : i32
    return %c0_i32, %c0_i32_0, %c0_i32_1 : i32, i32, i32
  }
  func.func @transform_5(%arg0: i32) -> (i32, i32) {
    %c0_i32 = arith.constant 0 : i32
    %c0_i32_0 = arith.constant 0 : i32
    %c0_i32_1 = arith.constant 0 : i32
    return %c0_i32, %c0_i32_0 : i32, i32
  }
  func.func @transform_6(%arg0: i32) -> (i32, i32) {
    %c0_i32 = arith.constant 0 : i32
    %c0_i32_0 = arith.constant 0 : i32
    %c0_i32_1 = arith.constant 0 : i32
    return %c0_i32, %c0_i32_0 : i32, i32
  }
  func.func @transform_7(%arg0: i32) -> (i32, i32) {
    %c0_i32 = arith.constant 0 : i32
    %c0_i32_0 = arith.constant 0 : i32
    return %arg0, %c0_i32 : i32, i32
  }
}

</mosaic_0001>

<bundles_post_ra>
// kernel: tpu_custom_call.1
= control target key start
LH: loop header
LB: loop body
LE: loop exit
PB: predicated region body
PF: predicated region fallthrough
CT: control target
= control target key end

     0   :  { %12 = vsyncpa [#allocation3], 0  ;;  %s980_s0 = inlined_call_operand.hbm [shape: bf16[8,128], index: 0, kind: input, shape index: {}]   ;;  %s981_s1 = inlined_call_operand.hbm [shape: bf16[128,128], index: 1, kind: input, shape index: {}]   ;;  %s982_s2 = inlined_call_operand.vmem [shape: f32[1,128], index: 2, kind: input, shape index: {}]   ;;  %s983_s3 = inlined_call_operand.hbm [shape: bf16[2,128,128], index: 3, kind: input, shape index: {}]   ;;  %s984_s4 = inlined_call_operand.vmem [shape: f32[2,1,128], index: 4, kind: input, shape index: {}]   ;;  %s985_s5 = inlined_call_operand.hbm [shape: bf16[128,128], index: 5, kind: input, shape index: {}]   ;;  %s986_s6 = inlined_call_operand.vmem [shape: f32[1,128], index: 6, kind: input, shape index: {}]   ;;  %s987_s7 = inlined_call_operand.hbm [shape: f32[8,128], index: 7, kind: output, shape index: {}]  }
   0x1   :  { %13 = vsyncpa [#allocation6], 0 }
   0x2   :  { %14 = vsyncpa [#allocation9], 0 }
   0x3   :  { %15 = vsyncpa [#allocation4], 0  ;;  %s855_s24 = smov [#allocation5]  }
   0x4   :  { %s31_s25 = sshll.u32 %s855_s24, 4  ;;  %s32_s25 = int_to_ptr.vmem [resolvable:$true] %s31_s25 }
   0x5   :  { %s755_s26 = scalar_lea.vmem %s32_s25, 1024  ;;  %p760_p1 = scmp.lt.s32.totalorder %s32_s25, %s32_s25 }
   0x6   :  { %p756_p0 = scmp.ne.s32.totalorder %s32_s25, %s755_s26  ;;  %p761_p2 = scmp.lt.s32.totalorder %s755_s26, %s755_s26 }
   0x8   :  { %p762_p3 = por %p761_p2, %p760_p1 }
   0xa   :  { %p763_p4 = pnand %p762_p3, %p756_p0 }
   0xc   :  { %766 = shalt.err (!%p763_p4)
}
   0xd   :  { %s856_s27 = smov 64   ;;  %s857_s28 = smov 4  }
   0xe   :  { %37 = dma.hbm_to_vmem [thread:$0]  %s981_s1, 1024, %s32_s25, [#allocation6], %s856_s27, %s856_s27, %s857_s28  }
   0xf   :  { %s858_s8 = smov [#allocation2]   ;;  %s859_s10 = smov [#allocation7]  }
  0x10   :  { %s22_s9 = sshll.u32 %s858_s8, 4  ;;  %s45_s11 = sshll.u32 %s859_s10, 4  ;;  %s23_s9 = int_to_ptr.vmem [resolvable:$true] %s22_s9  ;;  %s46_s11 = int_to_ptr.vmem [resolvable:$true] %s45_s11 }
  0x11   :  { %s775_s12 = scalar_lea.vmem %s23_s9, 64  ;;  %p780_p6 = scmp.lt.s32.totalorder %s23_s9, %s23_s9 }
  0x12   :  { %p776_p5 = scmp.ne.s32.totalorder %s23_s9, %s775_s12  ;;  %p781_p7 = scmp.lt.s32.totalorder %s775_s12, %s775_s12 }
  0x14   :  { %p782_p8 = por %p781_p7, %p780_p6 }
  0x16   :  { %p783_p9 = pnand %p782_p8, %p776_p5 }
  0x18   :  { %786 = shalt.err (!%p783_p9)
}
  0x19   :  { %25 = dma.hbm_to_vmem [thread:$0]  %s980_s0, 64, %s23_s9, [#allocation3]  }
  0x1a   :  { %s795_s15 = scalar_lea.vmem %s46_s11, 2048  ;;  %p800_p11 = scmp.lt.s32.totalorder %s46_s11, %s46_s11 }
  0x1b   :  { %p796_p10 = scmp.ne.s32.totalorder %s46_s11, %s795_s15  ;;  %p801_p12 = scmp.lt.s32.totalorder %s795_s15, %s795_s15 }
  0x1d   :  { %p802_p13 = por %p801_p12, %p800_p11 }
  0x1f   :  { %p803_p0 = pnand %p802_p13, %p796_p10 }
  0x21   :  { %806 = shalt.err (!%p803_p0)
}
  0x22   :  { %51 = dma.hbm_to_vmem [thread:$0]  %s983_s3, 2048, %s46_s11, [#allocation6], %s856_s27, %s856_s27, %s857_s28  }
  0x23   :  { %s860_s17 = smov [#allocation8]  }
  0x24   :  { %s59_s18 = sshll.u32 %s860_s17, 4  ;;  %s60_s18 = int_to_ptr.vmem [resolvable:$true] %s59_s18 }
  0x25   :  { %s815_s19 = scalar_lea.vmem %s60_s18, 1024  ;;  %p820_p2 = scmp.lt.s32.totalorder %s60_s18, %s60_s18 }
  0x26   :  { %p816_p1 = scmp.ne.s32.totalorder %s60_s18, %s815_s19  ;;  %p821_p3 = scmp.lt.s32.totalorder %s815_s19, %s815_s19 }
  0x28   :  { %p822_p4 = por %p821_p3, %p820_p2 }
  0x2a   :  { %p823_p5 = pnand %p822_p4, %p816_p1 }
  0x2c   :  { %826 = shalt.err (!%p823_p5)
}
  0x2d   :  { %65 = dma.hbm_to_vmem [thread:$0]  %s985_s5, 1024, %s60_s18, [#allocation9], %s856_s27, %s856_s27, %s857_s28  }
  0x2e   :  { %847 = dma.done.wait [#allocation3], 64  }
  0x2f   :  { %848 = vsyncadd [#allocation3], 4294967232 }
  0x30   :  { %849 = dma.done.wait [#allocation6], 3072  }
  0x31   :  { %850 = vsyncadd [#allocation6], 4294964224 }
  0x32   :  { %851 = dma.done.wait [#allocation9], 1024  }
  0x33   :  { %852 = vsyncadd [#allocation9], 4294966272  ;;  %v861_v0 = vmov 0.0   ;;  %vm862_vm0 = vmmov 0   ;;  %v715_v1 = vld [vmem:[#allocation5 + $0x38] sm:$0xff]   ;;  %v716_v2 = vld [vmem:[#allocation5 + $0x30] sm:$0xff]  }
  0x34   :  { %626 = vmatprep.subr.bf16.mxu0 %v861_v0  ;;  %642 = vmatprep.mubr.msk.bf16.mxu0 %vm862_vm0, %v861_v0  ;;  %v717_v3 = vld [vmem:[#allocation5 + $0x28] sm:$0xff]   ;;  %v723_v4 = vld [vmem:[#allocation7 + $0x38] sm:$0xff]   ;;  %v718_v5 = vld [vmem:[#allocation5 + $0x20] sm:$0xff]   ;;  %s863_s26 = smov [#allocation10]  }
  0x35   :  { %646 = vmatprep.subr.bf16.mxu1 %v861_v0  ;;  %662 = vmatprep.mubr.msk.bf16.mxu1 %vm862_vm0, %v861_v0  ;;  %v724_v6 = vld [vmem:[#allocation7 + $0x30] sm:$0xff]   ;;  %v719_v7 = vld [vmem:[#allocation5 + $0x18] sm:$0xff]   ;;  %v725_v8 = vld [vmem:[#allocation7 + $0x28] sm:$0xff]   ;;  %s542_s27 = sshll.u32 %s863_s26, 4  ;;  %s543_s27 = int_to_ptr.vmem [resolvable:$true] %s542_s27 }
  0x36   :  { %627 = vmatpush3.bf16.msra.mxu0 %v715_v1  ;;  %647 = vmatpush3.bf16.msra.mxu1 %v723_v4  ;;  %v720_v9 = vld [vmem:[#allocation5 + $0x10] sm:$0xff]   ;;  %v726_v10 = vld [vmem:[#allocation7 + $0x20] sm:$0xff]   ;;  %v721_v11 = vld [vmem:[#allocation5 + $0x8] sm:$0xff]   ;;  %p832_p7 = scmp.lt.s32.totalorder %s543_s27, %s543_s27 }
  0x37   :  { %628 = vmatprep.subr.bf16.mxu0 %v861_v0  ;;  %648 = vmatprep.subr.bf16.mxu1 %v861_v0  ;;  %v727_v12 = vld [vmem:[#allocation7 + $0x18] sm:$0xff]   ;;  %v722_v13 = vld [vmem:[#allocation5] sm:$0xff]   ;;  %v728_v14 = vld [vmem:[#allocation7 + $0x10] sm:$0xff]  }
  0x38   :  { %v81_v15 = vld [vmem:[#allocation2] sm:$0xf]  ;;  %v729_v16 = vld [vmem:[#allocation7 + $0x8] sm:$0xff]   ;;  %v730_v17 = vld [vmem:[#allocation7] sm:$0xff]  }
  0x39   :  { %v731_v18 = vld [vmem:[#allocation7 + $0x78] sm:$0xff]   ;;  %v732_v19 = vld [vmem:[#allocation7 + $0x70] sm:$0xff]   ;;  %v733_v20 = vld [vmem:[#allocation7 + $0x68] sm:$0xff]  }
  0x3a   :  { %629 = vmatpush3.bf16.msra.mxu0 %v716_v2  ;;  %649 = vmatpush3.bf16.msra.mxu1 %v724_v6  ;;  %v734_v21 = vld [vmem:[#allocation7 + $0x60] sm:$0xff]   ;;  %v735_v22 = vld [vmem:[#allocation7 + $0x58] sm:$0xff]   ;;  %v736_v23 = vld [vmem:[#allocation7 + $0x50] sm:$0xff]  }
  0x3b   :  { %630 = vmatprep.subr.bf16.mxu0 %v861_v0  ;;  %650 = vmatprep.subr.bf16.mxu1 %v861_v0  ;;  %v553_v24 = vld [vmem:[%s982_s2] ss:$0 sm:$0xff]  ;;  %v737_v32 = vld [vmem:[#allocation7 + $0x48] sm:$0xff]   ;;  %v738_v33 = vld [vmem:[#allocation7 + $0x40] sm:$0xff]  }
  0x3c   :  { %v739_v34 = vld [vmem:[#allocation8 + $0x38] sm:$0xff]   ;;  %v740_v35 = vld [vmem:[#allocation8 + $0x30] sm:$0xff]   ;;  %v741_v36 = vld [vmem:[#allocation8 + $0x28] sm:$0xff]  }
  0x3d   :  { %v742_v37 = vld [vmem:[#allocation8 + $0x20] sm:$0xff]   ;;  %v743_v38 = vld [vmem:[#allocation8 + $0x18] sm:$0xff]   ;;  %v744_v39 = vld [vmem:[#allocation8 + $0x10] sm:$0xff]  }
  0x3e   :  { %631 = vmatpush3.bf16.msra.mxu0 %v717_v3  ;;  %651 = vmatpush3.bf16.msra.mxu1 %v725_v8  ;;  %v562_v40 = vld [vmem:[%s984_s4] ss:$0 sm:$0xff]  ;;  %v745_v48 = vld [vmem:[#allocation8 + $0x8] sm:$0xff]   ;;  %v746_v49 = vld [vmem:[#allocation8] sm:$0xff]  }
  0x3f   :  { %632 = vmatprep.subr.bf16.mxu0 %v861_v0  ;;  %652 = vmatprep.subr.bf16.mxu1 %v861_v0  ;;  %v572_v50 = vld [vmem:[%s984_s4 + $0x1] ss:$0 sm:$0xff]  ;;  %v581_v58 = vld [vmem:[%s986_s6] ss:$0 sm:$0xff]  ;;  %s827_s4 = scalar_lea.vmem %s543_s27, 128 }
  0x40   :  { %p828_p6 = scmp.ne.s32.totalorder %s543_s27, %s827_s4  ;;  %p833_p8 = scmp.lt.s32.totalorder %s827_s4, %s827_s4 }
  0x42   :  { %633 = vmatpush3.bf16.msra.mxu0 %v718_v5  ;;  %653 = vmatpush3.bf16.msra.mxu1 %v726_v10  ;;  %p834_p9 = por %p833_p8, %p832_p7 }
  0x43   :  { %634 = vmatprep.subr.bf16.mxu0 %v861_v0  ;;  %654 = vmatprep.subr.bf16.mxu1 %v861_v0 }
  0x44   :  { %p835_p10 = pnand %p834_p9, %p828_p6 }
  0x46   :  { %635 = vmatpush3.bf16.msra.mxu0 %v719_v7  ;;  %655 = vmatpush3.bf16.msra.mxu1 %v727_v12 }
  0x47   :  { %636 = vmatprep.subr.bf16.mxu0 %v861_v0  ;;  %656 = vmatprep.subr.bf16.mxu1 %v861_v0 }
  0x4a   :  { %637 = vmatpush3.bf16.msra.mxu0 %v720_v9  ;;  %657 = vmatpush3.bf16.msra.mxu1 %v728_v14 }
  0x4b   :  { %638 = vmatprep.subr.bf16.mxu0 %v861_v0  ;;  %658 = vmatprep.subr.bf16.mxu1 %v861_v0 }
  0x4e   :  { %639 = vmatpush3.bf16.msra.mxu0 %v721_v11  ;;  %659 = vmatpush3.bf16.msra.mxu1 %v729_v16 }
  0x4f   :  { %640 = vmatprep.subr.bf16.mxu0 %v861_v0  ;;  %660 = vmatprep.subr.bf16.mxu1 %v861_v0 }
  0x52   :  { %641 = vmatpush3.bf16.msra.mxu0 %v722_v13  ;;  %661 = vmatpush3.bf16.msra.mxu1 %v730_v17 }
  0x53   :  { %666 = vmatprep.subr.bf16.mxu0 %v861_v0  ;;  %686 = vmatprep.subr.bf16.mxu1 %v861_v0 }
  0x55   :  { %643 = vmatmul.mubr.bf16.vlgmr.msra.gmra.mxu0 %v81_v15 }
  0x56   :  { %682 = vmatprep.mubr.msk.bf16.mxu0 %vm862_vm0, %v861_v0  ;;  %667 = vmatpush3.bf16.msra.mxu0 %v731_v18 }
  0x57   :  { %668 = vmatprep.subr.bf16.mxu0 %v861_v0 }
  0x5a   :  { %669 = vmatpush3.bf16.msra.mxu0 %v732_v19 }
  0x5b   :  { %670 = vmatprep.subr.bf16.mxu0 %v861_v0 }
  0x5e   :  { %671 = vmatpush3.bf16.msra.mxu0 %v733_v20 }
  0x5f   :  { %672 = vmatprep.subr.bf16.mxu0 %v861_v0 }
  0x62   :  { %673 = vmatpush3.bf16.msra.mxu0 %v734_v21 }
  0x63   :  { %674 = vmatprep.subr.bf16.mxu0 %v861_v0 }
  0x66   :  { %675 = vmatpush3.bf16.msra.mxu0 %v735_v22 }
  0x67   :  { %676 = vmatprep.subr.bf16.mxu0 %v861_v0 }
  0x6a   :  { %677 = vmatpush3.bf16.msra.mxu0 %v736_v23 }
  0x6b   :  { %678 = vmatprep.subr.bf16.mxu0 %v861_v0 }
  0x6e   :  { %679 = vmatpush3.bf16.msra.mxu0 %v737_v32 }
  0x6f   :  { %680 = vmatprep.subr.bf16.mxu0 %v861_v0 }
  0x72   :  { %681 = vmatpush3.bf16.msra.mxu0 %v738_v33 }
 0x115   :  { %v187_v25 = vpop.f32.mrf.mxu0 }
 0x116   :  { %v188_v26 = vadd.f32 %v553_v24, %v187_v25 }
 0x117   :  { %v644_v27 = vpop.f32.mrf.mxu0 }
 0x118   :  { %v193_v28 = vmax.f32 %v188_v26, 0.0 }
 0x119   :  { %v190_v29 = vpop.f32.mrf.mxu0 }
 0x11a   :  { %v194_v30 = vpack.c.bf16 %v193_v28, %v193_v28 }
 0x11b   :  { %v645_v31 = vpop.f32.mrf.mxu0 }
 0x11c   :  { %663 = vmatmul.mubr.bf16.vlgmr.msra.gmra.mxu1 %v194_v30 }
 0x11d   :  { %702 = vmatprep.mubr.msk.bf16.mxu1 %vm862_vm0, %v861_v0  ;;  %687 = vmatpush3.bf16.msra.mxu1 %v739_v34 }
 0x11e   :  { %688 = vmatprep.subr.bf16.mxu1 %v861_v0 }
 0x121   :  { %689 = vmatpush3.bf16.msra.mxu1 %v740_v35 }
 0x122   :  { %690 = vmatprep.subr.bf16.mxu1 %v861_v0 }
 0x125   :  { %691 = vmatpush3.bf16.msra.mxu1 %v741_v36 }
 0x126   :  { %692 = vmatprep.subr.bf16.mxu1 %v861_v0 }
 0x129   :  { %693 = vmatpush3.bf16.msra.mxu1 %v742_v37 }
 0x12a   :  { %694 = vmatprep.subr.bf16.mxu1 %v861_v0 }
 0x12d   :  { %695 = vmatpush3.bf16.msra.mxu1 %v743_v38 }
 0x12e   :  { %696 = vmatprep.subr.bf16.mxu1 %v861_v0 }
 0x131   :  { %697 = vmatpush3.bf16.msra.mxu1 %v744_v39 }
 0x132   :  { %698 = vmatprep.subr.bf16.mxu1 %v861_v0 }
 0x135   :  { %699 = vmatpush3.bf16.msra.mxu1 %v745_v48 }
 0x136   :  { %700 = vmatprep.subr.bf16.mxu1 %v861_v0 }
 0x139   :  { %701 = vmatpush3.bf16.msra.mxu1 %v746_v49 }
 0x1dc   :  { %v300_v41 = vpop.f32.mrf.mxu1 }
 0x1dd   :  { %v301_v42 = vadd.f32 %v562_v40, %v300_v41 }
 0x1de   :  { %v664_v43 = vpop.f32.mrf.mxu1 }
 0x1df   :  { %v306_v44 = vmax.f32 %v301_v42, 0.0 }
 0x1e0   :  { %v303_v45 = vpop.f32.mrf.mxu1 }
 0x1e1   :  { %v307_v46 = vpack.c.bf16 %v306_v44, %v306_v44 }
 0x1e2   :  { %v665_v47 = vpop.f32.mrf.mxu1 }
 0x1e3   :  { %683 = vmatmul.mubr.bf16.vlgmr.msra.gmra.mxu0 %v307_v46 }
 0x2a3   :  { %v415_v51 = vpop.f32.mrf.mxu0 }
 0x2a4   :  { %v416_v52 = vadd.f32 %v572_v50, %v415_v51 }
 0x2a5   :  { %v684_v53 = vpop.f32.mrf.mxu0 }
 0x2a6   :  { %v421_v54 = vmax.f32 %v416_v52, 0.0 }
 0x2a7   :  { %v418_v55 = vpop.f32.mrf.mxu0 }
 0x2a8   :  { %v422_v56 = vpack.c.bf16 %v421_v54, %v421_v54 }
 0x2a9   :  { %v685_v57 = vpop.f32.mrf.mxu0 }
 0x2aa   :  { %703 = vmatmul.mubr.bf16.vlgmr.msra.gmra.mxu1 %v422_v56 }
 0x36a   :  { %v528_v59 = vpop.f32.mrf.mxu1 }
 0x36b   :  { %v529_v60 = vadd.f32 %v581_v58, %v528_v59 }
 0x36c   :  { %v704_v61 = vpop.f32.mrf.mxu1 }
 0x36d   :  { %v534_v62 = vmax.f32 %v529_v60, 0.0 }
 0x36e   :  { %v531_v63 = vpop.f32.mrf.mxu1 }
 0x36f   :  { %535 = vst [vmem:[#allocation10] sm:$0xff] %v534_v62 }
 0x370   :  { %v705_v0 = vpop.f32.mrf.mxu1 }
 0x371   :  { %838 = shalt.err (!%p835_p10)
}
 0x372   :  { %545 = dma.vmem_to_hbm [thread:$0]  %s543_s27, 128, %s987_s7, [#allocation4]  }
 0x373   :  { %853 = dma.done.wait [#allocation4], 128  }
 0x374   :  { %854 = vsyncadd [#allocation4], 4294967168 }
 0x375   :  { %549 = vsyncpa [#allocation3], 1 }
 0x376   :  { %550 = vsyncpa [#allocation6], 1 }
 0x377   :  { %551 = vsyncpa [#allocation9], 1 }
 0x378   :  { %552 = vsyncpa [#allocation4], 1 }

</bundles_post_ra>
